<compile_context>
chip_gen: v7x
topology: tpu7x:2x2x1
jax: 0.10.0
libtpu: 0.0.40
codegen_flags: <defaults>
</compile_context>

<pallas_src>
import functools

import jax
import jax.numpy as jnp
from jax.experimental import pallas as pl
from jax.experimental.pallas import tpu as pltpu


def _cdiv(a, b):
    return -(-a // b)


def _tensorcores_per_chip():
    """Best-effort TensorCore count behind one JAX device (2 on v4 / v7x)."""
    try:
        d = jax.devices()[0]
        if d.platform != "tpu":
            return 1
        kind = str(getattr(d, "device_kind", "")).lower()
        if ("v4" in kind) or ("v5p" in kind) or ("7x" in kind) or ("v7" in kind):
            return 2
    except Exception:
        pass
    return 1


def _dsc_ce_kernel(p_ref, g_ref, den_ref, num_ref, ce_ref, *,
                   eps, L, tile_l, kpp, needs_mask):
    # p_ref / g_ref: (TILE_R, TILE_L) tile of the flattened (rows, L) inputs.
    # den/num/ce refs: (1, TILE_R, 1) per-row accumulators, resident across the
    # reduction (last) grid axis because their index_map ignores k.
    k = pl.program_id(2)

    @pl.when(k == 0)
    def _init():
        den_ref[...] = jnp.zeros_like(den_ref)
        num_ref[...] = jnp.zeros_like(num_ref)
        ce_ref[...] = jnp.zeros_like(ce_ref)

    def accumulate(p, g):
        pfac = p * (1.0 - p)  # probs_with_factor = p0 * pow(1 - p0, 1)
        den_ref[...] += jnp.sum(pfac + g, axis=1, keepdims=True)[None]
        # The factor of 2 for `num` is applied once in the wrapper finish.
        num_ref[...] += jnp.sum(pfac * g, axis=1, keepdims=True)[None]
        p_cl = jnp.clip(p, eps, 1.0 - eps)
        ce_ref[...] += jnp.sum(g * jnp.log(p_cl), axis=1, keepdims=True)[None]

    if not needs_mask:
        # L divides TILE_L and no clamped padding tiles exist: fast unmasked path.
        accumulate(p_ref[...].astype(jnp.float32), g_ref[...].astype(jnp.float32))
        return

    # Number of valid lanes in this tile; <= 0 for fully-out-of-range padding
    # tiles that the clamped index_map re-reads.
    rem = L - (pl.program_id(0) * kpp + k) * tile_l

    @pl.when(rem >= tile_l)
    def _full():
        accumulate(p_ref[...].astype(jnp.float32), g_ref[...].astype(jnp.float32))

    @pl.when(rem < tile_l)
    def _tail():
        lane = jax.lax.broadcasted_iota(jnp.int32, p_ref.shape, dimension=1)
        valid = lane < rem
        # jnp.where (not a multiply) so garbage lanes (possibly NaN) cannot leak.
        accumulate(jnp.where(valid, p_ref[...].astype(jnp.float32), 0.0),
                   jnp.where(valid, g_ref[...].astype(jnp.float32), 0.0))


def _row_reductions(pf, gf, *, eps, tile_l_cap=None, force_parts=None):
    """Per-row (N*C) reductions over the flattened spatial axis (no padding)."""
    rows, L = pf.shape
    LANE = 128

    # --- Row tile: full rows when they fit (always a legal full-dim block),
    # else 128.  Ragged row tails are partial blocks whose garbage rows are
    # sliced off by the caller. ---
    TILE_R = rows if rows <= 128 else 128
    num_i = _cdiv(rows, TILE_R)

    # --- Spatial tile: sized from a byte budget (~8 MiB combined p+g per grid
    # step => ~16 MiB double-buffered, inside the 32 MiB scoped-VMEM limit on
    # every generation including v7x), always a multiple of 128 unless it
    # covers all of L. ---
    bytes_per_col = TILE_R * (pf.dtype.itemsize + gf.dtype.itemsize)
    budget = 8 * 1024 * 1024
    tl = max(LANE, (budget // bytes_per_col) // LANE * LANE)
    if tile_l_cap is not None:
        tl = min(tl, max(LANE, (int(tile_l_cap) // LANE) * LANE))
    TILE_L = L if L <= tl else tl
    num_k = _cdiv(L, TILE_L)

    # --- Optional split of the spatial reduction across a leading 'parallel'
    # axis so both v7x TensorCores stream data when there are few row tiles.
    # Applied only when it is free on single-TC chips (even tile count, zero
    # redundant DMA) or when a 2-TC chip is detected. ---
    if force_parts is not None:
        P = int(force_parts)
    else:
        P = 1
        if num_i < 4 and num_k >= 2 and (num_k % 2 == 0 or _tensorcores_per_chip() >= 2):
            P = 2
    KPP = _cdiv(num_k, P)

    needs_mask = (L % TILE_L != 0) or (P * KPP != num_k)
    grid = (P, num_i, KPP)
    kernel = functools.partial(_dsc_ce_kernel, eps=float(eps), L=int(L),
                               tile_l=int(TILE_L), kpp=int(KPP),
                               needs_mask=bool(needs_mask))

    def in_map(p, i, k):
        gk = p * KPP + k
        # Clamp any padding tiles back in bounds; the in-kernel lane mask
        # zeroes their contribution.
        gk = jnp.minimum(gk, num_k - 1)
        return (i, gk)

    out_map = lambda p, i, k: (p, i, 0)

    in_bytes = pf.size * pf.dtype.itemsize + gf.size * gf.dtype.itemsize
    cost = pl.CostEstimate(
        flops=12 * rows * L,
        transcendentals=rows * L,
        bytes_accessed=int(in_bytes + 3 * P * rows * 4),
    )

    out_sds = jax.ShapeDtypeStruct((P, rows, 1), jnp.float32)
    den, num, ce = pl.pallas_call(
        kernel,
        out_shape=(out_sds, out_sds, out_sds),
        grid_spec=pltpu.PrefetchScalarGridSpec(
            num_scalar_prefetch=0,
            grid=grid,
            in_specs=[
                pl.BlockSpec((TILE_R, TILE_L), in_map),
                pl.BlockSpec((TILE_R, TILE_L), in_map),
            ],
            out_specs=[
                pl.BlockSpec((1, TILE_R, 1), out_map),
                pl.BlockSpec((1, TILE_R, 1), out_map),
                pl.BlockSpec((1, TILE_R, 1), out_map),
            ],
        ),
        compiler_params=pltpu.CompilerParams(
            dimension_semantics=("parallel", "parallel", "arbitrary"),
            vmem_limit_bytes=32 * 1024 * 1024,
        ),
        cost_estimate=cost,
    )(pf, gf)

    # Sum the (tiny) per-part partials and drop the trailing singleton.
    return (jnp.sum(den, axis=0)[:, 0],
            jnp.sum(num, axis=0)[:, 0],
            jnp.sum(ce, axis=0)[:, 0])


def dsc_cev2_loss(y_pred, y_true, *, w, gamma, beta=None, ignored_class=None,
                  alpha=0.5):
    """Matches DSC_CEv2_loss_fun(beta, w, gamma, ignored_class, alpha).forward."""
    assert y_pred.shape == y_true.shape, "predict & target shape do not match"
    del beta, alpha  # unused by the reference forward pass
    epsilon = 1e-6
    smooth = 1.0

    N, C = y_pred.shape[0], y_pred.shape[1]
    L = 1
    for d in y_pred.shape[2:]:
        L *= int(d)

    # Free (contiguous) reshapes; dtype is passed through so bf16 callers stream
    # half the bytes. The kernel upcasts to f32 and accumulates in f32.
    pf = y_pred.reshape(N * C, L)
    gf = y_true.reshape(N * C, L)

    den, num, ce = _row_reductions(pf, gf, eps=epsilon)
    den = den.reshape(N, C)
    num = num.reshape(N, C)
    ce = ce.reshape(N, C)

    # --- DSC term (x2 on num hoisted out of the kernel) ---
    dsc = (2.0 * num + smooth) / (den + smooth)  # [N, C]
    if ignored_class:
        dsc_c = jnp.mean(dsc, axis=0)            # [C]
        for i in ignored_class:
            dsc_c = dsc_c.at[i].set(1.0)
        dsc_scalar = 1.0 - jnp.mean(dsc_c)
    else:
        dsc_scalar = 1.0 - jnp.mean(dsc)

    # --- Weighted cross-entropy term (classes c >= len(w) contribute 0) ---
    w_arr = jnp.asarray(w, dtype=jnp.float32)
    nw = int(w_arr.shape[0])
    ce_weighted_sum = jnp.sum(ce[:, :nw] * w_arr[None, :])
    CL = -ce_weighted_sum / (N * L)

    return gamma * dsc_scalar + CL


def _reference(y_pred, y_true, *, w, gamma, ignored_class=None):
    """Pure-JAX transcription of the PyTorch forward for correctness checks."""
    eps = 1e-6
    smooth = 1.0
    p0 = y_pred.astype(jnp.float32)
    g0 = y_true.astype(jnp.float32)
    pfac = p0 * (1.0 - p0)
    den = jnp.sum(pfac, axis=(2, 3)) + jnp.sum(g0, axis=(2, 3))
    num = jnp.sum(2.0 * pfac * g0, axis=(2, 3))
    dsc = (num + smooth) / (den + smooth)
    if ignored_class:
        dsc = jnp.mean(dsc, axis=0)
        for i in ignored_class:
            dsc = dsc.at[i].set(1.0)
        dsc = 1.0 - jnp.mean(dsc)
    else:
        dsc = 1.0 - jnp.mean(dsc)
    yp = jnp.clip(p0, eps, 1.0 - eps)
    nw = len(w)
    w_arr = jnp.asarray(w, jnp.float32)
    p_loss = jnp.zeros_like(p0)
    p_loss = p_loss.at[:, :nw].set(
        (g0 * jnp.log(yp))[:, :nw] * w_arr[None, :, None, None])
    CL = -jnp.sum(p_loss, axis=1)
    CL = jnp.mean(CL)
    return gamma * dsc + CL


if __name__ == "__main__":
    key = jax.random.PRNGKey(0)
    k1, k2, k3, k4 = jax.random.split(key, 4)

    # --- Main f32 check at the module's natural small shape ---
    N, C, H, W = 2, 4, 16, 16
    logits = jax.random.normal(k1, (N, C, H, W), dtype=jnp.float32)
    y_pred = jax.nn.softmax(logits, axis=1)                        # probabilities
    labels = jax.random.randint(k2, (N, H, W), 0, C)
    y_true = jax.nn.one_hot(labels, C, axis=1, dtype=jnp.float32)  # [N, C, H, W]

    w = [1.0, 2.0, 0.5, 1.5]
    gamma = 0.7

    loss = dsc_cev2_loss(y_pred, y_true, w=w, gamma=gamma, ignored_class=None)
    jax.block_until_ready(loss)
    ref = _reference(y_pred, y_true, w=w, gamma=gamma, ignored_class=None)
    assert jnp.allclose(loss, ref, rtol=1e-4, atol=1e-5), (loss, ref)

    # --- ignored_class branch (wrapper-only glue) ---
    loss_ig = dsc_cev2_loss(y_pred, y_true, w=w, gamma=gamma, ignored_class=[0])
    jax.block_until_ready(loss_ig)
    ref_ig = _reference(y_pred, y_true, w=w, gamma=gamma, ignored_class=[0])
    assert jnp.allclose(loss_ig, ref_ig, rtol=1e-4, atol=1e-5), (loss_ig, ref_ig)

    # --- bf16 streaming path (half HBM traffic; f32 accumulation in-kernel) ---
    yp_bf = y_pred.astype(jnp.bfloat16)
    yt_bf = y_true.astype(jnp.bfloat16)
    loss_bf = dsc_cev2_loss(yp_bf, yt_bf, w=w, gamma=gamma, ignored_class=None)
    jax.block_until_ready(loss_bf)
    ref_bf = _reference(yp_bf.astype(jnp.float32), yt_bf.astype(jnp.float32),
                        w=w, gamma=gamma, ignored_class=None)
    assert jnp.allclose(loss_bf, ref_bf, rtol=1e-3, atol=1e-4), (loss_bf, ref_bf)

    # --- Ragged-L + forced part-split check: exercises the in-kernel lane mask,
    # the clamped padding tile, and the leading 'parallel' split. ---
    rows, Lr = 6, 300
    pr = jax.random.uniform(k3, (rows, Lr), dtype=jnp.float32,
                            minval=1e-3, maxval=1.0 - 1e-3)
    gr = (jax.random.uniform(k4, (rows, Lr)) > 0.7).astype(jnp.float32)
    den_r, num_r, ce_r = _row_reductions(pr, gr, eps=1e-6,
                                         tile_l_cap=128, force_parts=2)
    jax.block_until_ready((den_r, num_r, ce_r))
    pfac_r = pr * (1.0 - pr)
    assert jnp.allclose(den_r, jnp.sum(pfac_r + gr, axis=1), rtol=1e-5, atol=1e-4)
    assert jnp.allclose(num_r, jnp.sum(pfac_r * gr, axis=1), rtol=1e-5, atol=1e-4)
    ce_ref_r = jnp.sum(gr * jnp.log(jnp.clip(pr, 1e-6, 1.0 - 1e-6)), axis=1)
    assert jnp.allclose(ce_r, ce_ref_r, rtol=1e-5, atol=1e-4)

    print("KERNEL_OK")
</pallas_src>

<mosaic_0001>
module attributes {stable_mosaic.version = 11 : i64} {
  func.func @_dsc_ce_kernel(%arg0: i32, %arg1: i32, %arg2: i32, %arg3: memref<8x256xf32, #tpu.memory_space<vmem>>, %arg4: memref<8x256xf32, #tpu.memory_space<vmem>>, %arg5: memref<1x8x1xf32, #tpu.memory_space<vmem>>, %arg6: memref<1x8x1xf32, #tpu.memory_space<vmem>>, %arg7: memref<1x8x1xf32, #tpu.memory_space<vmem>>) attributes {dimension_semantics = [#tpu.dimension_semantics<parallel>, #tpu.dimension_semantics<parallel>, #tpu.dimension_semantics<arbitrary>], iteration_bounds = array<i64: 1, 1, 1>, scalar_prefetch = 0 : i64, scratch_operands = 0 : i64, tpu.core_type = #tpu.core_type<tc>, window_params = [{transform_indices = @transform_0, window_bounds = array<i64: 8, 256>}, {transform_indices = @transform_1, window_bounds = array<i64: 8, 256>}, {transform_indices = @transform_2, window_bounds = array<i64: 1, 8, 1>}, {transform_indices = @transform_3, window_bounds = array<i64: 1, 8, 1>}, {transform_indices = @transform_4, window_bounds = array<i64: 1, 8, 1>}]} {
    %c0_i32 = arith.constant 0 : i32
    %0 = arith.cmpi eq, %arg2, %c0_i32 : i32
    %1 = arith.extui %0 : i1 to i32
    %c0_i32_0 = arith.constant 0 : i32
    %2 = arith.cmpi ne, %1, %c0_i32_0 : i32
    scf.if %2 {
      %cst_27 = arith.constant 0.000000e+00 : f32
      %34 = vector.broadcast %cst_27 : f32 to vector<1x8x1xf32>
      %c0_28 = arith.constant 0 : index
      %c0_29 = arith.constant 0 : index
      %c0_30 = arith.constant 0 : index
      %35 = vector.load %arg5[%c0_28, %c0_29, %c0_30] : memref<1x8x1xf32, #tpu.memory_space<vmem>>, vector<1x8x1xf32>
      tpu.vector_store %arg5[%c0_28, %c0_29, %c0_30], %34 {strides = array<i32>} : memref<1x8x1xf32, #tpu.memory_space<vmem>>, vector<1x8x1xf32>,
      %cst_31 = arith.constant 0.000000e+00 : f32
      %36 = vector.broadcast %cst_31 : f32 to vector<1x8x1xf32>
      %c0_32 = arith.constant 0 : index
      %c0_33 = arith.constant 0 : index
      %c0_34 = arith.constant 0 : index
      %37 = vector.load %arg6[%c0_32, %c0_33, %c0_34] : memref<1x8x1xf32, #tpu.memory_space<vmem>>, vector<1x8x1xf32>
      tpu.vector_store %arg6[%c0_32, %c0_33, %c0_34], %36 {strides = array<i32>} : memref<1x8x1xf32, #tpu.memory_space<vmem>>, vector<1x8x1xf32>,
      %cst_35 = arith.constant 0.000000e+00 : f32
      %38 = vector.broadcast %cst_35 : f32 to vector<1x8x1xf32>
      %c0_36 = arith.constant 0 : index
      %c0_37 = arith.constant 0 : index
      %c0_38 = arith.constant 0 : index
      %39 = vector.load %arg7[%c0_36, %c0_37, %c0_38] : memref<1x8x1xf32, #tpu.memory_space<vmem>>, vector<1x8x1xf32>
      tpu.vector_store %arg7[%c0_36, %c0_37, %c0_38], %38 {strides = array<i32>} : memref<1x8x1xf32, #tpu.memory_space<vmem>>, vector<1x8x1xf32>,
    } else {
    }
    %c0 = arith.constant 0 : index
    %c0_1 = arith.constant 0 : index
    %3 = vector.load %arg3[%c0, %c0_1] : memref<8x256xf32, #tpu.memory_space<vmem>>, vector<8x256xf32>
    %c0_2 = arith.constant 0 : index
    %c0_3 = arith.constant 0 : index
    %4 = vector.load %arg4[%c0_2, %c0_3] : memref<8x256xf32, #tpu.memory_space<vmem>>, vector<8x256xf32>
    %cst = arith.constant 1.000000e+00 : f32
    %5 = vector.broadcast %cst : f32 to vector<8x256xf32>
    %6 = arith.subf %5, %3 : vector<8x256xf32>
    %7 = arith.mulf %3, %6 : vector<8x256xf32>
    %c0_4 = arith.constant 0 : index
    %c0_5 = arith.constant 0 : index
    %c0_6 = arith.constant 0 : index
    %8 = vector.load %arg5[%c0_4, %c0_5, %c0_6] : memref<1x8x1xf32, #tpu.memory_space<vmem>>, vector<1x8x1xf32>
    %9 = arith.addf %7, %4 : vector<8x256xf32>
    %cst_7 = arith.constant dense<0.000000e+00> : vector<8xf32>
    %10 = vector.multi_reduction <add>, %9, %cst_7 [1] : vector<8x256xf32> to vector<8xf32>
    %11 = vector.shape_cast %10 : vector<8xf32> to vector<8x1xf32>
    %12 = vector.shape_cast %11 : vector<8x1xf32> to vector<1x8x1xf32>
    %13 = arith.addf %8, %12 : vector<1x8x1xf32>
    %c0_8 = arith.constant 0 : index
    %c0_9 = arith.constant 0 : index
    %c0_10 = arith.constant 0 : index
    %14 = vector.load %arg5[%c0_8, %c0_9, %c0_10] : memref<1x8x1xf32, #tpu.memory_space<vmem>>, vector<1x8x1xf32>
    tpu.vector_store %arg5[%c0_8, %c0_9, %c0_10], %13 {strides = array<i32>} : memref<1x8x1xf32, #tpu.memory_space<vmem>>, vector<1x8x1xf32>,
    %c0_11 = arith.constant 0 : index
    %c0_12 = arith.constant 0 : index
    %c0_13 = arith.constant 0 : index
    %15 = vector.load %arg6[%c0_11, %c0_12, %c0_13] : memref<1x8x1xf32, #tpu.memory_space<vmem>>, vector<1x8x1xf32>
    %16 = arith.mulf %7, %4 : vector<8x256xf32>
    %cst_14 = arith.constant dense<0.000000e+00> : vector<8xf32>
    %17 = vector.multi_reduction <add>, %16, %cst_14 [1] : vector<8x256xf32> to vector<8xf32>
    %18 = vector.shape_cast %17 : vector<8xf32> to vector<8x1xf32>
    %19 = vector.shape_cast %18 : vector<8x1xf32> to vector<1x8x1xf32>
    %20 = arith.addf %15, %19 : vector<1x8x1xf32>
    %c0_15 = arith.constant 0 : index
    %c0_16 = arith.constant 0 : index
    %c0_17 = arith.constant 0 : index
    %21 = vector.load %arg6[%c0_15, %c0_16, %c0_17] : memref<1x8x1xf32, #tpu.memory_space<vmem>>, vector<1x8x1xf32>
    tpu.vector_store %arg6[%c0_15, %c0_16, %c0_17], %20 {strides = array<i32>} : memref<1x8x1xf32, #tpu.memory_space<vmem>>, vector<1x8x1xf32>,
    %cst_18 = arith.constant 9.99999997E-7 : f32
    %cst_19 = arith.constant 0.999998986 : f32
    %22 = vector.broadcast %cst_18 : f32 to vector<8x256xf32>
    %23 = arith.maximumf %22, %3 : vector<8x256xf32>
    %24 = vector.broadcast %cst_19 : f32 to vector<8x256xf32>
    %25 = arith.minimumf %24, %23 : vector<8x256xf32>
    %c0_20 = arith.constant 0 : index
    %c0_21 = arith.constant 0 : index
    %c0_22 = arith.constant 0 : index
    %26 = vector.load %arg7[%c0_20, %c0_21, %c0_22] : memref<1x8x1xf32, #tpu.memory_space<vmem>>, vector<1x8x1xf32>
    %27 = math.log %25 : vector<8x256xf32>
    %28 = arith.mulf %4, %27 : vector<8x256xf32>
    %cst_23 = arith.constant dense<0.000000e+00> : vector<8xf32>
    %29 = vector.multi_reduction <add>, %28, %cst_23 [1] : vector<8x256xf32> to vector<8xf32>
    %30 = vector.shape_cast %29 : vector<8xf32> to vector<8x1xf32>
    %31 = vector.shape_cast %30 : vector<8x1xf32> to vector<1x8x1xf32>
    %32 = arith.addf %26, %31 : vector<1x8x1xf32>
    %c0_24 = arith.constant 0 : index
    %c0_25 = arith.constant 0 : index
    %c0_26 = arith.constant 0 : index
    %33 = vector.load %arg7[%c0_24, %c0_25, %c0_26] : memref<1x8x1xf32, #tpu.memory_space<vmem>>, vector<1x8x1xf32>
    tpu.vector_store %arg7[%c0_24, %c0_25, %c0_26], %32 {strides = array<i32>} : memref<1x8x1xf32, #tpu.memory_space<vmem>>, vector<1x8x1xf32>,
    return
  }
  func.func @transform_0(%arg0: i32, %arg1: i32, %arg2: i32) -> (i32, i32) {
    %c1_i32 = arith.constant 1 : i32
    %0 = arith.muli %arg0, %c1_i32 : i32
    %1 = arith.addi %0, %arg2 : i32
    %c0_i32 = arith.constant 0 : i32
    %2 = arith.minsi %1, %c0_i32 : i32
    %c0_i32_0 = arith.constant 0 : i32
    return %arg1, %2 : i32, i32
  }
  func.func @transform_1(%arg0: i32, %arg1: i32, %arg2: i32) -> (i32, i32) {
    %c1_i32 = arith.constant 1 : i32
    %0 = arith.muli %arg0, %c1_i32 : i32
    %1 = arith.addi %0, %arg2 : i32
    %c0_i32 = arith.constant 0 : i32
    %2 = arith.minsi %1, %c0_i32 : i32
    %c0_i32_0 = arith.constant 0 : i32
    return %arg1, %2 : i32, i32
  }
  func.func @transform_2(%arg0: i32, %arg1: i32, %arg2: i32) -> (i32, i32, i32) {
    %c0_i32 = arith.constant 0 : i32
    %c0_i32_0 = arith.constant 0 : i32
    return %arg0, %arg1, %c0_i32 : i32, i32, i32
  }
  func.func @transform_3(%arg0: i32, %arg1: i32, %arg2: i32) -> (i32, i32, i32) {
    %c0_i32 = arith.constant 0 : i32
    %c0_i32_0 = arith.constant 0 : i32
    return %arg0, %arg1, %c0_i32 : i32, i32, i32
  }
  func.func @transform_4(%arg0: i32, %arg1: i32, %arg2: i32) -> (i32, i32, i32) {
    %c0_i32 = arith.constant 0 : i32
    %c0_i32_0 = arith.constant 0 : i32
    return %arg0, %arg1, %c0_i32 : i32, i32, i32
  }
}

</mosaic_0001>

<bundles_post_ra>
// kernel: tpu_custom_call.1
= control target key start
LH: loop header
LB: loop body
LE: loop exit
PB: predicated region body
PF: predicated region fallthrough
CT: control target
= control target key end

     0   :  { %10 = vsyncpa [#allocation3], 0  ;;  %s265_s0 = inlined_call_operand.hbm [shape: f32[8,256], index: 0, kind: input, shape index: {}]   ;;  %s266_s1 = inlined_call_operand.hbm [shape: f32[8,256], index: 1, kind: input, shape index: {}]   ;;  %s267_s2 = inlined_call_operand.vmem [shape: f32[1,8,1], index: 2, kind: output, shape index: {0}]   ;;  %s268_s3 = inlined_call_operand.vmem [shape: f32[1,8,1], index: 3, kind: output, shape index: {1}]   ;;  %s269_s4 = inlined_call_operand.vmem [shape: f32[1,8,1], index: 4, kind: output, shape index: {2}]  }
   0x1   :  { %11 = vsyncpa [#allocation5], 0  ;;  %s180_s15 = smov [#allocation2]   ;;  %s181_s17 = smov [#allocation4]  }
   0x2   :  { %s24_s16 = sshll.u32 %s180_s15, 4  ;;  %s40_s18 = sshll.u32 %s181_s17, 4  ;;  %s25_s16 = int_to_ptr.vmem [resolvable:$true] %s24_s16  ;;  %s41_s18 = int_to_ptr.vmem [resolvable:$true] %s40_s18 }
   0x3   :  { %s132_s21 = scalar_lea.hbm %s265_s0, 256 }
   0x4   :  { %p133_p0 = scmp.ne.s32.totalorder %s265_s0, %s132_s21  ;;  %p136_p1 = scmp.lt.u32.totalorder %s132_s21, %s265_s0 }
   0x6   :  { %p138_p2 = pnand %p136_p1, %p133_p0 }
   0x8   :  { %141 = shalt.err (!%p138_p2)
}
   0x9   :  { %s142_s26 = scalar_lea.vmem %s25_s16, 256  ;;  %p147_p4 = scmp.lt.s32.totalorder %s25_s16, %s25_s16 }
   0xa   :  { %p143_p3 = scmp.ne.s32.totalorder %s25_s16, %s142_s26  ;;  %p148_p5 = scmp.lt.s32.totalorder %s142_s26, %s142_s26 }
   0xc   :  { %p149_p6 = por %p148_p5, %p147_p4 }
   0xe   :  { %p150_p7 = pnand %p149_p6, %p143_p3 }
  0x10   :  { %153 = shalt.err (!%p150_p7)
}
  0x11   :  { %27 = dma.hbm_to_vmem [thread:$0]  %s265_s0, 256, %s25_s16, [#allocation3]  }
  0x12   :  { %s154_s5 = scalar_lea.hbm %s266_s1, 256 }
  0x13   :  { %p155_p8 = scmp.ne.s32.totalorder %s266_s1, %s154_s5  ;;  %p158_p9 = scmp.lt.u32.totalorder %s154_s5, %s266_s1 }
  0x15   :  { %p160_p10 = pnand %p158_p9, %p155_p8 }
  0x17   :  { %163 = shalt.err (!%p160_p10)
}
  0x18   :  { %s164_s10 = scalar_lea.vmem %s41_s18, 256  ;;  %p169_p12 = scmp.lt.s32.totalorder %s41_s18, %s41_s18 }
  0x19   :  { %p165_p11 = scmp.ne.s32.totalorder %s41_s18, %s164_s10  ;;  %p170_p13 = scmp.lt.s32.totalorder %s164_s10, %s164_s10 }
  0x1b   :  { %p171_p0 = por %p170_p13, %p169_p12 }
  0x1d   :  { %p172_p1 = pnand %p171_p0, %p165_p11 }
  0x1f   :  { %175 = shalt.err (!%p172_p1)
}
  0x20   :  { %43 = dma.hbm_to_vmem [thread:$0]  %s266_s1, 256, %s41_s18, [#allocation5]  }
  0x21   :  { %176 = dma.done.wait [#allocation3], 256  }
  0x22   :  { %177 = vsyncadd [#allocation3], 4294967040 }
  0x23   :  { %178 = dma.done.wait [#allocation5], 256  }
  0x24   :  { %179 = vsyncadd [#allocation5], 4294967040  ;;  %vm62_vm0 = vcmask 7168   ;;  %v182_v0 = vmov 0.0   ;;  %v66_v1 = vld [vmem:[#allocation2] sm:$0xff]  ;;  %v67_v2 = vld [vmem:[#allocation2 + $0x8] sm:$0xff] }
  0x25   :  { %63 = vst.msk [vmem:[%s267_s2] sm:$0xff] %vm62_vm0, %v182_v0  ;;  %64 = vst.msk [vmem:[%s268_s3] sm:$0xff] %vm62_vm0, %v182_v0  ;;  %v70_v3 = vsub.f32 1.0, %v66_v1  ;;  %v71_v4 = vsub.f32 1.0, %v67_v2  ;;  %v91_v5 = vmax.f32 %v66_v1, 1e-06 }
  0x26   :  { %65 = vst.msk [vmem:[%s269_s4] sm:$0xff] %vm62_vm0, %v182_v0  ;;  %v68_v6 = vld [vmem:[#allocation4] sm:$0xff]  ;;  %v69_v7 = vld [vmem:[#allocation4 + $0x8] sm:$0xff]  ;;  %v92_v8 = vmax.f32 %v67_v2, 1e-06 }
  0x27   :  { %v72_v9 = vmul.f32 %v70_v3, %v66_v1  ;;  %v73_v10 = vmul.f32 %v71_v4, %v67_v2  ;;  %v93_v11 = vmin.f32 %v91_v5, 0.999999 }
  0x28   :  { %v94_v12 = vmin.f32 %v92_v8, 0.999999 }
  0x29   :  { %v75_v13 = vadd.f32 %v72_v9, %v68_v6  ;;  %v76_v14 = vadd.f32 %v73_v10, %v69_v7  ;;  %128 = vlog2.f32 %v93_v11  ;;  %v84_v15 = vmul.f32 %v72_v9, %v68_v6 }
  0x2a   :  { %130 = vlog2.f32 %v94_v12  ;;  %v85_v16 = vmul.f32 %v73_v10, %v69_v7 }
  0x2b   :  { %v77_v17 = vadd.f32 %v76_v14, %v75_v13 }
  0x2c   :  { %v86_v18 = vadd.f32 %v85_v16, %v84_v15  ;;  %v74_v26 = vld [vmem:[%s267_s2] sm:$0xff] }
  0x2d   :  { %78 = vadd.xlane.f32.xlu0 %v77_v17  ;;  %v83_v29 = vld [vmem:[%s268_s3] sm:$0xff] }
  0x2e   :  { %v95_v32 = vld [vmem:[%s269_s4] sm:$0xff] }
  0x31   :  { %87 = vadd.xlane.f32.xlu0 %v86_v18 }
  0x33   :  { %v129_v19 = vpop.eup %128 }
  0x34   :  { %v131_v20 = vpop.eup %130  ;;  %v97_v21 = vmul.f32 0.6931472, %v129_v19 }
  0x35   :  { %v99_v22 = vmul.f32 0.6931472, %v131_v20 }
  0x36   :  { %v100_v23 = vmul.f32 %v97_v21, %v68_v6 }
  0x37   :  { %v101_v24 = vmul.f32 %v99_v22, %v69_v7 }
  0x39   :  { %v102_v25 = vadd.f32 %v101_v24, %v100_v23 }
  0x3b   :  { %103 = vadd.xlane.f32.xlu1 %v102_v25 }
  0xba   :  { %v79_v27 = vpop.xlane.xlu0 %78 }
  0xbb   :  { %v80_v28 = vadd.f32 %v79_v27, %v74_v26 }
  0xbd   :  { %82 = vst.msk [vmem:[%s267_s2] sm:$0xff] %vm62_vm0, %v80_v28 }
  0xbe   :  { %v88_v30 = vpop.xlane.xlu0 %87 }
  0xbf   :  { %v89_v31 = vadd.f32 %v88_v30, %v83_v29 }
  0xc1   :  { %90 = vst.msk [vmem:[%s268_s3] sm:$0xff] %vm62_vm0, %v89_v31 }
  0xc8   :  { %v104_v33 = vpop.xlane.xlu1 %103 }
  0xc9   :  { %v105_v34 = vadd.f32 %v104_v33, %v95_v32 }
  0xcb   :  { %106 = vst.msk [vmem:[%s269_s4] sm:$0xff] %vm62_vm0, %v105_v34 }
  0xcc   :  { %119 = vsyncpa [#allocation3], 1 }
  0xcd   :  { %120 = vsyncpa [#allocation5], 1 }

</bundles_post_ra>
